<compile_context>
chip_gen: v6e
topology: v6e:2x2x1
jax: 0.10.0
libtpu: 0.0.40
codegen_flags: <defaults>
</compile_context>

<pallas_src>
import functools

import jax
import jax.numpy as jnp
from jax.experimental import pallas as pl
from jax.experimental.pallas import tpu as pltpu

DEFAULT_TILE_N = 8192                  # rows of x per grid step (sweepable)
VMEM_LIMIT_BYTES = 48 * 1024 * 1024    # < v7x 64 MiB physical, > v5e 16 MiB default
LANE = 128


def _round_up(x, m):
    return (x + m - 1) // m * m


def mlp_kernel(x_ref, w1_ref, b1_ref, w2_ref, b2_ref, w3_ref, b3_ref, o_ref):
    # f32 strict path uses HIGHEST MXU precision; bf16 path uses the fast path.
    prec = (jax.lax.Precision.HIGHEST if w1_ref.dtype == jnp.float32
            else jax.lax.Precision.DEFAULT)
    # Cast the streamed x tile in-kernel (x is read from HBM once, as stored).
    x = x_ref[...].astype(w1_ref.dtype)

    # Layer 1: (T, D) @ (D, 128) + (1, 128) -> ReLU       (f32 accumulation)
    h1 = jnp.dot(x, w1_ref[...], preferred_element_type=jnp.float32,
                 precision=prec)
    h1 = jnp.maximum(h1 + b1_ref[...], 0.0)

    # Layer 2: (T, 128) @ (128, 128) + (1, 128) -> ReLU   (hidden 64 padded to 128)
    h2 = jnp.dot(h1.astype(w2_ref.dtype), w2_ref[...],
                 preferred_element_type=jnp.float32, precision=prec)
    h2 = jnp.maximum(h2 + b2_ref[...], 0.0)

    # Layer 3 (out_features=1) off the MXU: VPU multiply + XLU lane reduction.
    out = jnp.sum(h2 * w3_ref[...], axis=-1, keepdims=True) + b3_ref[...]
    o_ref[...] = out.astype(o_ref.dtype)


def prepare_params(params, dtype=jnp.bfloat16):
    """One-time prep: PyTorch (out,in) -> (in,out), zero-pad hidden dims to the
    128-lane granularity, reshape biases to (1,out), store w3 as a (1,H2p) row
    for the VPU/XLU output layer, cast matmul weights to `dtype` (bf16 default)."""
    w1 = params["w1"].T                    # (D,  H1)
    w2 = params["w2"].T                    # (H1, H2)
    w3 = params["w3"].reshape(1, -1)       # (1,  H2)  row, used on the VPU
    b1 = params["b1"].reshape(1, -1)
    b2 = params["b2"].reshape(1, -1)
    b3 = params["b3"].reshape(1, 1)

    h1, h2 = w1.shape[1], w2.shape[1]
    h1p, h2p = _round_up(h1, LANE), _round_up(h2, LANE)
    if h2p != h2:   # pad hidden-2 (64 -> 128): zero cols of w2/b2/w3 (ReLU(0+0)=0)
        w2 = jnp.pad(w2, ((0, 0), (0, h2p - h2)))
        b2 = jnp.pad(b2, ((0, 0), (0, h2p - h2)))
        w3 = jnp.pad(w3, ((0, 0), (0, h2p - h2)))
    if h1p != h1:   # (already 128 for the default config)
        w1 = jnp.pad(w1, ((0, 0), (0, h1p - h1)))
        b1 = jnp.pad(b1, ((0, 0), (0, h1p - h1)))
        w2 = jnp.pad(w2, ((0, h1p - h1), (0, 0)))

    f32 = jnp.float32
    return dict(w1=w1.astype(dtype), b1=b1.astype(f32),
                w2=w2.astype(dtype), b2=b2.astype(f32),
                w3=w3.astype(f32),   b3=b3.astype(f32))   # layer-3 stays f32 (VPU)


def _pick_tile(n, tile_n):
    if n <= 1024:                       # tiny batch: one step covering it
        return max(8, _round_up(n, 8))
    # Guarantee >= 2 grid steps so ("parallel",) can shard the batch across
    # both TensorCores on v7x; also caps the per-step VMEM working set.
    half = _round_up((n + 1) // 2, 8)
    return max(512, min(tile_n, half))


@functools.partial(jax.jit, static_argnames=("tile_n",))
def mlp_regression_forward(x, prepared, tile_n=DEFAULT_TILE_N):
    """x: (N, D) f32. prepared: output of prepare_params. Returns (N, 1) f32."""
    n, d = x.shape
    w1, b1 = prepared["w1"], prepared["b1"]
    w2, b2 = prepared["w2"], prepared["b2"]
    w3, b3 = prepared["w3"], prepared["b3"]

    tile = _pick_tile(n, tile_n)
    grid = (pl.cdiv(n, tile),)          # ragged tail: Pallas masks OOB stores

    const = lambda a: pl.BlockSpec(a.shape, lambda i: (0, 0))  # VMEM-resident

    return pl.pallas_call(
        mlp_kernel,
        out_shape=jax.ShapeDtypeStruct((n, 1), jnp.float32),
        grid=grid,
        in_specs=[pl.BlockSpec((tile, d), lambda i: (i, 0)),   # streamed batch tiles
                  const(w1), const(b1),
                  const(w2), const(b2),
                  const(w3), const(b3)],
        out_specs=pl.BlockSpec((tile, 1), lambda i: (i, 0)),
        compiler_params=pltpu.CompilerParams(
            dimension_semantics=("parallel",),     # shard batch across TCs (v7x)
            vmem_limit_bytes=VMEM_LIMIT_BYTES),
    )(x, w1, b1, w2, b2, w3, b3)


def init_params(key, input_dim, hidden_dims=(128, 64)):
    """Deterministic init mirroring nn.Linear default (uniform +/- 1/sqrt(fan_in))."""
    dims = [input_dim, *hidden_dims, 1]
    params = {}
    for i in range(len(dims) - 1):
        fan_in, fan_out = dims[i], dims[i + 1]
        key, kw, kb = jax.random.split(key, 3)
        bound = 1.0 / (fan_in ** 0.5)
        params[f"w{i+1}"] = jax.random.uniform(
            kw, (fan_out, fan_in), jnp.float32, -bound, bound)  # PyTorch (out, in)
        params[f"b{i+1}"] = jax.random.uniform(
            kb, (fan_out,), jnp.float32, -bound, bound)
    return params


def reference_forward(x, params):
    h = jnp.maximum(x @ params["w1"].T + params["b1"], 0.0)
    h = jnp.maximum(h @ params["w2"].T + params["b2"], 0.0)
    return h @ params["w3"].T + params["b3"]


if __name__ == "__main__":
    key = jax.random.PRNGKey(0)
    input_dim = 32
    kx_s, kx_m, kx_l, kp = jax.random.split(key, 4)
    params = init_params(kp, input_dim, hidden_dims=(128, 64))

    prepared_f32 = prepare_params(params, dtype=jnp.float32)     # strict path
    prepared_bf16 = prepare_params(params, dtype=jnp.bfloat16)   # default perf path

    # 1) Tiny batch, f32 strict path (matches the toy usage).
    x_s = jax.random.normal(kx_s, (8, input_dim), jnp.float32)
    out_s = jax.block_until_ready(mlp_regression_forward(x_s, prepared_f32))
    ref_s = reference_forward(x_s, params)
    assert out_s.shape == (8, 1), out_s.shape
    assert jnp.allclose(out_s, ref_s, atol=1e-4, rtol=1e-4), "f32 small mismatch"

    # 2) Ragged multi-tile batch (grid=2, partial final block), f32 path.
    x_m = jax.random.normal(kx_m, (5000, input_dim), jnp.float32)
    out_m = jax.block_until_ready(mlp_regression_forward(x_m, prepared_f32))
    ref_m = reference_forward(x_m, params)
    assert out_m.shape == (5000, 1), out_m.shape
    assert jnp.allclose(out_m, ref_m, atol=1e-4, rtol=1e-4), "f32 mid mismatch"

    # 3) bf16 streaming path (default), exercises the full 8192-row tile + tail.
    x_l = jax.random.normal(kx_l, (20000, input_dim), jnp.float32)
    out_l = jax.block_until_ready(mlp_regression_forward(x_l, prepared_bf16))
    ref_l = reference_forward(x_l, params)
    assert out_l.shape == (20000, 1), out_l.shape
    assert jnp.allclose(out_l, ref_l, atol=5e-2, rtol=5e-2), "bf16 large mismatch"

    print("KERNEL_OK")
</pallas_src>

<mosaic_0001>
module attributes {stable_mosaic.version = 11 : i64} {
  func.func @mlp_kernel(%arg0: i32, %arg1: memref<8x32xf32, #tpu.memory_space<vmem>>, %arg2: memref<32x128xf32, #tpu.memory_space<vmem>>, %arg3: memref<1x128xf32, #tpu.memory_space<vmem>>, %arg4: memref<128x128xf32, #tpu.memory_space<vmem>>, %arg5: memref<1x128xf32, #tpu.memory_space<vmem>>, %arg6: memref<1x128xf32, #tpu.memory_space<vmem>>, %arg7: memref<1x1xf32, #tpu.memory_space<vmem>>, %arg8: memref<8x1xf32, #tpu.memory_space<vmem>>) attributes {dimension_semantics = [#tpu.dimension_semantics<parallel>], iteration_bounds = array<i64: 1>, scalar_prefetch = 0 : i64, scratch_operands = 0 : i64, tpu.core_type = #tpu.core_type<tc>, window_params = [{transform_indices = @transform_0, window_bounds = array<i64: 8, 32>}, {pipeline_mode = #tpu.pipeline_mode<synchronous>, transform_indices = @transform_1, window_bounds = array<i64: 32, 128>}, {pipeline_mode = #tpu.pipeline_mode<synchronous>, transform_indices = @transform_2, window_bounds = array<i64: 1, 128>}, {pipeline_mode = #tpu.pipeline_mode<synchronous>, transform_indices = @transform_3, window_bounds = array<i64: 128, 128>}, {pipeline_mode = #tpu.pipeline_mode<synchronous>, transform_indices = @transform_4, window_bounds = array<i64: 1, 128>}, {pipeline_mode = #tpu.pipeline_mode<synchronous>, transform_indices = @transform_5, window_bounds = array<i64: 1, 128>}, {pipeline_mode = #tpu.pipeline_mode<synchronous>, transform_indices = @transform_6, window_bounds = array<i64: 1, 1>}, {transform_indices = @transform_7, window_bounds = array<i64: 8, 1>}]} {
    %c0 = arith.constant 0 : index
    %c0_0 = arith.constant 0 : index
    %0 = vector.load %arg1[%c0, %c0_0] : memref<8x32xf32, #tpu.memory_space<vmem>>, vector<8x32xf32>
    %c0_1 = arith.constant 0 : index
    %c0_2 = arith.constant 0 : index
    %1 = vector.load %arg2[%c0_1, %c0_2] : memref<32x128xf32, #tpu.memory_space<vmem>>, vector<32x128xf32>
    %cst = arith.constant dense<0.000000e+00> : vector<8x128xf32>
    %2 = tpu.matmul %0, %1, %cst {dimension_numbers = #tpu.dot_dimension_numbers<[1], [0], [0], [1], [0, 0, 1, 1], [], []>, precision = #tpu.contract_precision<fp32>} : vector<8x32xf32>, vector<32x128xf32>, vector<8x128xf32> -> vector<8x128xf32>
    %c0_3 = arith.constant 0 : index
    %c0_4 = arith.constant 0 : index
    %3 = vector.load %arg3[%c0_3, %c0_4] : memref<1x128xf32, #tpu.memory_space<vmem>>, vector<1x128xf32>
    %4 = vector.broadcast %3 : vector<1x128xf32> to vector<8x128xf32>
    %5 = arith.addf %2, %4 : vector<8x128xf32>
    %cst_5 = arith.constant 0.000000e+00 : f32
    %6 = vector.broadcast %cst_5 : f32 to vector<8x128xf32>
    %7 = arith.maximumf %5, %6 : vector<8x128xf32>
    %c0_6 = arith.constant 0 : index
    %c0_7 = arith.constant 0 : index
    %8 = vector.load %arg4[%c0_6, %c0_7] : memref<128x128xf32, #tpu.memory_space<vmem>>, vector<128x128xf32>
    %cst_8 = arith.constant dense<0.000000e+00> : vector<8x128xf32>
    %9 = tpu.matmul %7, %8, %cst_8 {dimension_numbers = #tpu.dot_dimension_numbers<[1], [0], [0], [1], [0, 0, 1, 1], [], []>, precision = #tpu.contract_precision<fp32>} : vector<8x128xf32>, vector<128x128xf32>, vector<8x128xf32> -> vector<8x128xf32>
    %c0_9 = arith.constant 0 : index
    %c0_10 = arith.constant 0 : index
    %10 = vector.load %arg5[%c0_9, %c0_10] : memref<1x128xf32, #tpu.memory_space<vmem>>, vector<1x128xf32>
    %11 = vector.broadcast %10 : vector<1x128xf32> to vector<8x128xf32>
    %12 = arith.addf %9, %11 : vector<8x128xf32>
    %cst_11 = arith.constant 0.000000e+00 : f32
    %13 = vector.broadcast %cst_11 : f32 to vector<8x128xf32>
    %14 = arith.maximumf %12, %13 : vector<8x128xf32>
    %c0_12 = arith.constant 0 : index
    %c0_13 = arith.constant 0 : index
    %15 = vector.load %arg6[%c0_12, %c0_13] : memref<1x128xf32, #tpu.memory_space<vmem>>, vector<1x128xf32>
    %16 = vector.broadcast %15 : vector<1x128xf32> to vector<8x128xf32>
    %17 = arith.mulf %14, %16 : vector<8x128xf32>
    %cst_14 = arith.constant dense<0.000000e+00> : vector<8xf32>
    %18 = vector.multi_reduction <add>, %17, %cst_14 [1] : vector<8x128xf32> to vector<8xf32>
    %19 = vector.shape_cast %18 : vector<8xf32> to vector<8x1xf32>
    %c0_15 = arith.constant 0 : index
    %c0_16 = arith.constant 0 : index
    %20 = vector.load %arg7[%c0_15, %c0_16] : memref<1x1xf32, #tpu.memory_space<vmem>>, vector<1x1xf32>
    %21 = vector.broadcast %20 : vector<1x1xf32> to vector<8x1xf32>
    %22 = arith.addf %19, %21 : vector<8x1xf32>
    %c0_17 = arith.constant 0 : index
    %c0_18 = arith.constant 0 : index
    %23 = vector.load %arg8[%c0_17, %c0_18] : memref<8x1xf32, #tpu.memory_space<vmem>>, vector<8x1xf32>
    tpu.vector_store %arg8[%c0_17, %c0_18], %22 {strides = array<i32>} : memref<8x1xf32, #tpu.memory_space<vmem>>, vector<8x1xf32>,
    return
  }
  func.func @transform_0(%arg0: i32) -> (i32, i32) {
    %c0_i32 = arith.constant 0 : i32
    %c0_i32_0 = arith.constant 0 : i32
    return %arg0, %c0_i32 : i32, i32
  }
  func.func @transform_1(%arg0: i32) -> (i32, i32) {
    %c0_i32 = arith.constant 0 : i32
    %c0_i32_0 = arith.constant 0 : i32
    %c0_i32_1 = arith.constant 0 : i32
    return %c0_i32, %c0_i32_0 : i32, i32
  }
  func.func @transform_2(%arg0: i32) -> (i32, i32) {
    %c0_i32 = arith.constant 0 : i32
    %c0_i32_0 = arith.constant 0 : i32
    %c0_i32_1 = arith.constant 0 : i32
    return %c0_i32, %c0_i32_0 : i32, i32
  }
  func.func @transform_3(%arg0: i32) -> (i32, i32) {
    %c0_i32 = arith.constant 0 : i32
    %c0_i32_0 = arith.constant 0 : i32
    %c0_i32_1 = arith.constant 0 : i32
    return %c0_i32, %c0_i32_0 : i32, i32
  }
  func.func @transform_4(%arg0: i32) -> (i32, i32) {
    %c0_i32 = arith.constant 0 : i32
    %c0_i32_0 = arith.constant 0 : i32
    %c0_i32_1 = arith.constant 0 : i32
    return %c0_i32, %c0_i32_0 : i32, i32
  }
  func.func @transform_5(%arg0: i32) -> (i32, i32) {
    %c0_i32 = arith.constant 0 : i32
    %c0_i32_0 = arith.constant 0 : i32
    %c0_i32_1 = arith.constant 0 : i32
    return %c0_i32, %c0_i32_0 : i32, i32
  }
  func.func @transform_6(%arg0: i32) -> (i32, i32) {
    %c0_i32 = arith.constant 0 : i32
    %c0_i32_0 = arith.constant 0 : i32
    %c0_i32_1 = arith.constant 0 : i32
    return %c0_i32, %c0_i32_0 : i32, i32
  }
  func.func @transform_7(%arg0: i32) -> (i32, i32) {
    %c0_i32 = arith.constant 0 : i32
    %c0_i32_0 = arith.constant 0 : i32
    return %arg0, %c0_i32 : i32, i32
  }
}

</mosaic_0001>

<bundles_post_ra>
// kernel: mlp_regression_forward.1
= control target key start
LH: loop header
LB: loop body
LE: loop exit
PB: predicated region body
PF: predicated region fallthrough
CT: control target
= control target key end

     0   :  { %s2254_s0 = inlined_call_operand.hbm [shape: f32[8,32], index: 0, kind: input, shape index: {}]   ;;  %s2255_s1 = inlined_call_operand.hbm [shape: f32[32,128], index: 1, kind: input, shape index: {}]   ;;  %s2256_s2 = inlined_call_operand.vmem [shape: f32[1,128], index: 2, kind: input, shape index: {}]   ;;  %s2257_s3 = inlined_call_operand.hbm [shape: f32[128,128], index: 3, kind: input, shape index: {}]   ;;  %s2258_s4 = inlined_call_operand.vmem [shape: f32[1,128], index: 4, kind: input, shape index: {}]   ;;  %s2259_s5 = inlined_call_operand.vmem [shape: f32[1,128], index: 5, kind: input, shape index: {}]   ;;  %s2260_s6 = inlined_call_operand.<no memory space> [shape: f32[1,1], index: 6, kind: input, shape index: {}]   ;;  %s2261_s7 = inlined_call_operand.vmem [shape: f32[8,1], index: 7, kind: output, shape index: {}]  }
   0x1   :  { %v12_v0 = vstv %s2260_s6 }
   0x2   :  { %13 = vst [vmem:[#allocation2] sm:$0x1] %v12_v0 }
   0x3   :  { %14 = vsyncpa [#allocation4], 0 }
   0x4   :  { %15 = vsyncpa [#allocation6], 0  ;;  %s1743_s26 = smov [#allocation5]  }
   0x5   :  { %s31_s27 = sshll.u32 %s1743_s26, 4  ;;  %s32_s27 = int_to_ptr.vmem [resolvable:$true] %s31_s27 }
   0x6   :  { %s1687_s28 = scalar_lea.vmem %s32_s27, 512  ;;  %p1692_p1 = scmp.lt.s32.totalorder %s32_s27, %s32_s27 }
   0x7   :  { %p1688_p0 = scmp.ne.s32.totalorder %s32_s27, %s1687_s28  ;;  %p1693_p2 = scmp.lt.s32.totalorder %s1687_s28, %s1687_s28 }
   0x9   :  { %p1694_p3 = por %p1693_p2, %p1692_p1 }
   0xb   :  { %p1695_p4 = pnand %p1694_p3, %p1688_p0 }
   0xd   :  { %1698 = shalt.err (!%p1695_p4)
}
   0xe   :  { %s1744_s29 = smov 128   ;;  %s1745_s30 = smov 8  }
   0xf   :  { %37 = dma.hbm_to_vmem [thread:$0]  %s2255_s1, 512, %s32_s27, [#allocation6], %s1744_s29, %s1744_s29, %s1745_s30  }
  0x10   :  { %s1746_s6 = smov [#allocation3]   ;;  %s1747_s11 = smov [#allocation7]  }
  0x11   :  { %s22_s10 = sshll.u32 %s1746_s6, 4  ;;  %s45_s12 = sshll.u32 %s1747_s11, 4  ;;  %s23_s10 = int_to_ptr.vmem [resolvable:$true] %s22_s10  ;;  %s46_s12 = int_to_ptr.vmem [resolvable:$true] %s45_s12 }
  0x12   :  { %s1707_s13 = scalar_lea.vmem %s23_s10, 128  ;;  %p1712_p6 = scmp.lt.s32.totalorder %s23_s10, %s23_s10 }
  0x13   :  { %p1708_p5 = scmp.ne.s32.totalorder %s23_s10, %s1707_s13  ;;  %p1713_p7 = scmp.lt.s32.totalorder %s1707_s13, %s1707_s13 }
  0x15   :  { %p1714_p8 = por %p1713_p7, %p1712_p6 }
  0x17   :  { %p1715_p9 = pnand %p1714_p8, %p1708_p5 }
  0x19   :  { %1718 = shalt.err (!%p1715_p9)
}
  0x1a   :  { %25 = dma.hbm_to_vmem [thread:$0]  %s2254_s0, 128, %s23_s10, [#allocation4]  }
  0x1b   :  { %s1727_s16 = scalar_lea.vmem %s46_s12, 2048  ;;  %p1732_p11 = scmp.lt.s32.totalorder %s46_s12, %s46_s12 }
  0x1c   :  { %p1728_p10 = scmp.ne.s32.totalorder %s46_s12, %s1727_s16  ;;  %p1733_p12 = scmp.lt.s32.totalorder %s1727_s16, %s1727_s16 }
  0x1e   :  { %p1734_p13 = por %p1733_p12, %p1732_p11 }
  0x20   :  { %p1735_p0 = pnand %p1734_p13, %p1728_p10 }
  0x22   :  { %1738 = shalt.err (!%p1735_p0)
}
  0x23   :  { %51 = dma.hbm_to_vmem [thread:$0]  %s2257_s3, 2048, %s46_s12, [#allocation6], %s1744_s29, %s1744_s29, %s1745_s30  }
  0x24   :  { %1739 = dma.done.wait [#allocation4], 128  }
  0x25   :  { %1740 = vsyncadd [#allocation4], 4294967168 }
  0x26   :  { %1741 = dma.done.wait [#allocation6], 2560  }
  0x27   :  { %1742 = vsyncadd [#allocation6], 4294964736  ;;  %v1748_v1 = vmov 0.0   ;;  %vm1749_vm0 = vmmov 0   ;;  %vm79_vm1 = vcmask 261120   ;;  %v71_v2 = vld [vmem:[#allocation5 + $0x18] sm:$0xff] }
  0x28   :  { %1396 = vmatprep.subr.mxu0 %v1748_v1  ;;  %1407 = vmatprep.subr.mxu1 %v1748_v1  ;;  %v70_v3 = vld [vmem:[#allocation5 + $0x10] sm:$0xff]  ;;  %v69_v4 = vld [vmem:[#allocation5 + $0x8] sm:$0xff]  ;;  %v1808_v5 = vand.u32 4294901760, %v71_v2  ;;  %v68_v8 = vld [vmem:[#allocation5] sm:$0xff]  ;;  %vm1252_vm2 = vcmask 7168  }
  0x29   :  { %1404 = vmatprep.mubr.msk.f32.mxu0 %vm1749_vm0, %v1748_v1  ;;  %1415 = vmatprep.mubr.msk.f32.mxu1 %vm1749_vm0, %v1748_v1  ;;  %v1810_v6 = vand.u32 4294901760, %v70_v3  ;;  %v1812_v7 = vand.u32 4294901760, %v69_v4  ;;  %v67_v9 = vld [vmem:[#allocation3] sm:$0xff]  ;;  %v1814_v10 = vand.u32 4294901760, %v68_v8  ;;  %v583_v34 = vld [vmem:[#allocation7 + $0x70] sm:$0xff]  ;;  %v582_v36 = vld [vmem:[#allocation7 + $0x68] sm:$0xff] }
  0x2a   :  { %v81_v11 = vsel %vm79_vm1, %v67_v9, 0  ;;  %1397 = vmatpush3.msra.mxu0 %v1808_v5  ;;  %v188_v12 = vsub.f32 %v71_v2, %v1808_v5  ;;  %v584_v33 = vld [vmem:[#allocation7 + $0x78] sm:$0xff]  ;;  %v1859_v37 = vand.u32 4294901760, %v583_v34  ;;  %v1867_v39 = vand.u32 4294901760, %v582_v36  ;;  %v581_v51 = vld [vmem:[#allocation7 + $0x60] sm:$0xff]  ;;  %v579_v56 = vld [vmem:[#allocation7 + $0x50] sm:$0xff] }
  0x2b   :  { %v1818_v13 = vand.u32 4294901760, %v81_v11  ;;  %v195_v14 = vsub.f32 %v70_v3, %v1810_v6  ;;  %v1822_v15 = vsub.f32 %v69_v4, %v1812_v7  ;;  %1398 = vmatprep.subr.mxu0 %v1748_v1  ;;  %v1826_v16 = vsub.f32 %v68_v8, %v1814_v10  ;;  %v580_v53 = vld [vmem:[#allocation7 + $0x58] sm:$0xff]  ;;  %v578_v60 = vld [vmem:[#allocation7 + $0x48] sm:$0xff]  ;;  %v577_v2 = vld [vmem:[#allocation7 + $0x40] sm:$0xff] }
  0x2c   :  { %1399 = vmatpush3.msra.mxu0 %v1810_v6  ;;  %v189_v17 = vand.u32 4294901760, %v188_v12  ;;  %v1852_v35 = vand.u32 4294901760, %v584_v33  ;;  %v1873_v40 = vsub.f32 %v583_v34, %v1859_v37  ;;  %v1882_v42 = vsub.f32 %v582_v36, %v1867_v39  ;;  %v576_v8 = vld [vmem:[#allocation7 + $0x38] sm:$0xff] }
  0x2d   :  { %v1830_v18 = vsub.f32 %v81_v11, %v1818_v13  ;;  %v196_v19 = vand.u32 4294901760, %v195_v14  ;;  %v203_v20 = vand.u32 4294901760, %v1822_v15  ;;  %1400 = vmatprep.subr.mxu0 %v1748_v1  ;;  %v210_v21 = vand.u32 4294901760, %v1826_v16 }
  0x2e   :  { %1401 = vmatpush3.msra.mxu0 %v1812_v7  ;;  %v190_v22 = vsub.f32 %v188_v12, %v189_v17  ;;  %v1865_v38 = vsub.f32 %v584_v33, %v1852_v35  ;;  %v693_v43 = vand.u32 4294901760, %v1873_v40  ;;  %v700_v45 = vand.u32 4294901760, %v1882_v42 }
  0x2f   :  { %v154_v23 = vand.u32 4294901760, %v1830_v18  ;;  %v197_v24 = vsub.f32 %v195_v14, %v196_v19  ;;  %v204_v25 = vsub.f32 %v1822_v15, %v203_v20  ;;  %1402 = vmatprep.subr.mxu0 %v1748_v1  ;;  %v211_v29 = vsub.f32 %v1826_v16, %v210_v21 }
  0x30   :  { %1403 = vmatpush3.msra.mxu0 %v1814_v10  ;;  %v191_v26 = vand.u32 4294901760, %v190_v22  ;;  %v686_v41 = vand.u32 4294901760, %v1865_v38  ;;  %v694_v46 = vsub.f32 %v1873_v40, %v693_v43  ;;  %v701_v48 = vsub.f32 %v1882_v42, %v700_v45 }
  0x31   :  { %v155_v27 = vsub.f32 %v1830_v18, %v154_v23  ;;  %v198_v28 = vand.u32 4294901760, %v197_v24  ;;  %1418 = vmatprep.subr.mxu0 %v1748_v1  ;;  %v205_v31 = vand.u32 4294901760, %v204_v25  ;;  %v212_v32 = vand.u32 4294901760, %v211_v29 }
  0x32   :  { %1408 = vmatpush3.msra.mxu1 %v191_v26  ;;  %v687_v44 = vsub.f32 %v1865_v38, %v686_v41  ;;  %v695_v49 = vand.u32 4294901760, %v694_v46  ;;  %v702_v50 = vand.u32 4294901760, %v701_v48  ;;  %v1925_v52 = vand.u32 4294901760, %v581_v51  ;;  %v573_v26 = vld [vmem:[#allocation7 + $0x20] sm:$0xff] }
  0x33   :  { %v156_v30 = vand.u32 4294901760, %v155_v27  ;;  %1409 = vmatprep.subr.mxu1 %v1748_v1  ;;  %v1930_v55 = vand.u32 4294901760, %v580_v53  ;;  %v1938_v59 = vand.u32 4294901760, %v579_v56  ;;  %v1949_v0 = vand.u32 4294901760, %v578_v60 }
  0x34   :  { %1410 = vmatpush3.msra.mxu1 %v198_v28  ;;  %v688_v47 = vand.u32 4294901760, %v687_v44  ;;  %v1928_v54 = vsub.f32 %v581_v51, %v1925_v52 }
  0x35   :  { %1405 = vmatmul.mubr.f32.vlgmr.msra.gmra.mxu0 %v156_v30  ;;  %1411 = vmatprep.subr.mxu1 %v1748_v1  ;;  %v1936_v58 = vsub.f32 %v580_v53, %v1930_v55  ;;  %v1947_v63 = vsub.f32 %v579_v56, %v1938_v59  ;;  %v2006_v30 = vand.u32 4294901760, %v573_v26  ;;  %v570_v56 = vld [vmem:[#allocation7 + $0x8] sm:$0xff] }
  0x36   :  { %1419 = vmatpush3.msra.mxu0 %v188_v12  ;;  %1412 = vmatpush3.msra.mxu1 %v205_v31  ;;  %v707_v57 = vand.u32 4294901760, %v1928_v54  ;;  %v1968_v12 = vand.u32 4294901760, %v576_v8 }
  0x37   :  { %1420 = vmatprep.subr.mxu0 %v1748_v1  ;;  %1413 = vmatprep.subr.mxu1 %v1748_v1  ;;  %v714_v62 = vand.u32 4294901760, %v1936_v58  ;;  %v2016_v44 = vsub.f32 %v573_v26, %v2006_v30 }
  0x38   :  { %1421 = vmatpush3.msra.mxu0 %v195_v14  ;;  %1414 = vmatpush3.msra.mxu1 %v212_v32  ;;  %v708_v61 = vsub.f32 %v1928_v54, %v707_v57  ;;  %v575_v14 = vld [vmem:[#allocation7 + $0x30] sm:$0xff]  ;;  %v572_v32 = vld [vmem:[#allocation7 + $0x18] sm:$0xff] }
  0x39   :  { %1422 = vmatprep.subr.mxu0 %v1748_v1  ;;  %1416 = vmatmul.mubr.f32.vlgmr.msra.gmra.mxu1 %v1818_v13  ;;  %v715_v4 = vsub.f32 %v1936_v58, %v714_v62  ;;  %v2019_v46 = vand.u32 4294901760, %v572_v32 }
  0x3a   :  { %1423 = vmatpush3.msra.mxu0 %v1822_v15  ;;  %1429 = vmatprep.subr.mxu1 %v1748_v1  ;;  %v709_v3 = vand.u32 4294901760, %v708_v61 }
  0x3b   :  { %1424 = vmatprep.subr.mxu0 %v1748_v1  ;;  %1430 = vmatpush3.msra.mxu1 %v1808_v5  ;;  %v716_v9 = vand.u32 4294901760, %v715_v4  ;;  %v2031_v53 = vsub.f32 %v572_v32, %v2019_v46 }
  0x3c   :  { %1425 = vmatpush3.msra.mxu0 %v1826_v16  ;;  %1426 = vmatprep.mubr.msk.f32.mxu0 %vm1749_vm0, %v1748_v1 }
  0x3d   :  { %1431 = vmatprep.subr.mxu1 %v1748_v1  ;;  %1440 = vmatprep.subr.mxu0 %v1748_v1  ;;  %v2265_v4 = vand.u32 4294901760, %v2031_v53 }
  0x3e   :  { %1427 = vmatmul.mubr.f32.vlgmr.msra.gmra.mxu0 %v1830_v18  ;;  %1432 = vmatpush3.msra.mxu1 %v1810_v6  ;;  %v1981_v18 = vand.u32 4294901760, %v575_v14 }
  0x3f   :  { %1441 = vmatpush3.msra.mxu0 %v189_v17  ;;  %1433 = vmatprep.subr.mxu1 %v1748_v1  ;;  %v1979_v17 = vsub.f32 %v576_v8, %v1968_v12  ;;  %v569_v8 = vld [vmem:[#allocation7] sm:$0xff] }
  0x40   :  { %1442 = vmatprep.subr.mxu0 %v1748_v1  ;;  %1434 = vmatpush3.msra.mxu1 %v1812_v7 }
  0x41   :  { %1443 = vmatpush3.msra.mxu0 %v196_v19  ;;  %1435 = vmatprep.subr.mxu1 %v1748_v1  ;;  %v742_v22 = vand.u32 4294901760, %v1979_v17 }
  0x42   :  { %1444 = vmatprep.subr.mxu0 %v1748_v1  ;;  %1436 = vmatpush3.msra.mxu1 %v1814_v10 }
  0x43   :  { %1437 = vmatprep.mubr.msk.f32.mxu1 %vm1749_vm0, %v1748_v1  ;;  %1445 = vmatpush3.msra.mxu0 %v203_v20  ;;  %v574_v20 = vld [vmem:[#allocation7 + $0x28] sm:$0xff]  ;;  %v743_v27 = vsub.f32 %v1979_v17, %v742_v22 }
  0x44   :  { %1438 = vmatmul.mubr.f32.vlgmr.msra.gmra.mxu1 %v154_v23  ;;  %1446 = vmatprep.subr.mxu0 %v1748_v1  ;;  %v1989_v23 = vsub.f32 %v575_v14, %v1981_v18  ;;  %v1991_v24 = vand.u32 4294901760, %v574_v20 }
  0x45   :  { %1451 = vmatprep.subr.mxu1 %v1748_v1  ;;  %1447 = vmatpush3.msra.mxu0 %v210_v21  ;;  %v744_v33 = vand.u32 4294901760, %v743_v27 }
  0x46   :  { %1448 = vmatprep.mubr.msk.f32.mxu0 %vm1749_vm0, %v1748_v1  ;;  %1452 = vmatpush3.msra.mxu1 %v1808_v5  ;;  %v721_v5 = vand.u32 4294901760, %v1947_v63  ;;  %v749_v28 = vand.u32 4294901760, %v1989_v23  ;;  %v2004_v29 = vsub.f32 %v574_v20, %v1991_v24 }
  0x47   :  { %1449 = vmatmul.mubr.f32.vlgmr.msra.gmra.mxu0 %v1818_v13  ;;  %1453 = vmatprep.subr.mxu1 %v1748_v1 }
  0x48   :  { %1459 = vmatprep.mubr.msk.f32.mxu1 %vm1749_vm0, %v1748_v1  ;;  %1454 = vmatpush3.msra.mxu1 %v1810_v6  ;;  %v1958_v6 = vsub.f32 %v578_v60, %v1949_v0  ;;  %v750_v34 = vsub.f32 %v1989_v23, %v749_v28  ;;  %v2267_v36 = vand.u32 4294901760, %v2004_v29 }
  0x49   :  { %1462 = vmatprep.subr.mxu0 %v1748_v1  ;;  %1455 = vmatprep.subr.mxu1 %v1748_v1 }
  0x4a   :  { %1463 = vmatpush3.msra.mxu0 %v1852_v35  ;;  %1456 = vmatpush3.msra.mxu1 %v1812_v7  ;;  %v1961_v7 = vand.u32 4294901760, %v577_v2  ;;  %v728_v11 = vand.u32 4294901760, %v1958_v6  ;;  %v751_v48 = vand.u32 4294901760, %v750_v34 }
  0x4b   :  { %1464 = vmatprep.subr.mxu0 %v1748_v1  ;;  %1457 = vmatprep.subr.mxu1 %v1748_v1 }
  0x4c   :  { %1465 = vmatpush3.msra.mxu0 %v1859_v37  ;;  %1458 = vmatpush3.msra.mxu1 %v1814_v10  ;;  %v722_v10 = vsub.f32 %v1947_v63, %v721_v5  ;;  %v729_v16 = vsub.f32 %v1958_v6, %v728_v11 }
  0x4d   :  { %1466 = vmatprep.subr.mxu0 %v1748_v1  ;;  %1460 = vmatmul.mubr.f32.vlgmr.msra.gmra.mxu1 %v1818_v13  ;;  %v1972_v13 = vsub.f32 %v577_v2, %v1961_v7 }
  0x4e   :  { %1497 = vmatprep.subr.mxu1 %v1748_v1  ;;  %1467 = vmatpush3.msra.mxu0 %v1867_v39  ;;  %v723_v15 = vand.u32 4294901760, %v722_v10  ;;  %v730_v21 = vand.u32 4294901760, %v729_v16  ;;  %v771_v16 = vsub.f32 %v2031_v53, %v2265_v4 }
  0x4f   :  { %1498 = vmatpush3.msra.mxu1 %v688_v47  ;;  %1468 = vmatprep.subr.mxu0 %v1748_v1  ;;  %v735_v19 = vand.u32 4294901760, %v1972_v13  ;;  %v571_v47 = vld [vmem:[#allocation7 + $0x10] sm:$0xff] }
  0x50   :  { %1499 = vmatprep.subr.mxu1 %v1748_v1  ;;  %1529 = vmatprep.mubr.msk.f32.mxu1 %vm1749_vm0, %v1748_v1  ;;  %v2027_v51 = vand.u32 4294901760, %v571_v47  ;;  %v772_v26 = vand.u32 4294901760, %v771_v16 }
  0x51   :  { %1500 = vmatpush3.msra.mxu1 %v695_v49  ;;  %1494 = vmatprep.mubr.msk.f32.mxu0 %vm1749_vm0, %v1748_v1  ;;  %v736_v25 = vsub.f32 %v1972_v13, %v735_v19  ;;  %v757_v49 = vsub.f32 %v2004_v29, %v2267_v36 }
  0x52   :  { %1501 = vmatprep.subr.mxu1 %v1748_v1  ;;  %1469 = vmatpush3.msra.mxu0 %v1925_v52  ;;  %v2039_v2 = vsub.f32 %v571_v47, %v2027_v51 }
  0x53   :  { %1502 = vmatpush3.msra.mxu1 %v702_v50  ;;  %1470 = vmatprep.subr.mxu0 %v1748_v1  ;;  %v737_v31 = vand.u32 4294901760, %v736_v25  ;;  %v2266_v50 = vand.u32 4294901760, %v2016_v44  ;;  %v758_v60 = vand.u32 4294901760, %v757_v49 }
  0x54   :  { %1503 = vmatprep.subr.mxu1 %v1748_v1  ;;  %1471 = vmatpush3.msra.mxu0 %v1930_v55  ;;  %v2264_v10 = vand.u32 4294901760, %v2039_v2 }
  0x55   :  { %1472 = vmatprep.subr.mxu0 %v1748_v1  ;;  %1504 = vmatpush3.msra.mxu1 %v709_v3  ;;  %v764_v61 = vsub.f32 %v2016_v44, %v2266_v50  ;;  %v2041_v3 = vand.u32 4294901760, %v570_v56 }
  0x56   :  { %1473 = vmatpush3.msra.mxu0 %v1938_v59  ;;  %1505 = vmatprep.subr.mxu1 %v1748_v1  ;;  %v778_v20 = vsub.f32 %v2039_v2, %v2264_v10 }
  0x57   :  { %1474 = vmatprep.subr.mxu0 %v1748_v1  ;;  %1506 = vmatpush3.msra.mxu1 %v716_v9  ;;  %v765_v9 = vand.u32 4294901760, %v764_v61  ;;  %v2049_v14 = vsub.f32 %v570_v56, %v2041_v3 }
  0x58   :  { %1475 = vmatpush3.msra.mxu0 %v1949_v0  ;;  %1507 = vmatprep.subr.mxu1 %v1748_v1  ;;  %v779_v27 = vand.u32 4294901760, %v778_v20 }
  0x59   :  { %1476 = vmatprep.subr.mxu0 %v1748_v1  ;;  %1508 = vmatpush3.msra.mxu1 %v723_v15  ;;  %v2051_v15 = vand.u32 4294901760, %v569_v8 }
  0x5a   :  { %1477 = vmatpush3.msra.mxu0 %v1961_v7  ;;  %1509 = vmatprep.subr.mxu1 %v1748_v1 }
  0x5b   :  { %1478 = vmatprep.subr.mxu0 %v1748_v1  ;;  %1510 = vmatpush3.msra.mxu1 %v730_v21  ;;  %v2263_v21 = vand.u32 4294901760, %v2049_v14  ;;  %v2064_v25 = vsub.f32 %v569_v8, %v2051_v15 }
  0x5c   :  { %1479 = vmatpush3.msra.mxu0 %v1968_v12  ;;  %1511 = vmatprep.subr.mxu1 %v1748_v1 }
  0x5d   :  { %1480 = vmatprep.subr.mxu0 %v1748_v1  ;;  %1512 = vmatpush3.msra.mxu1 %v737_v31  ;;  %v785_v31 = vsub.f32 %v2049_v14, %v2263_v21  ;;  %v2262_v32 = vand.u32 4294901760, %v2064_v25 }
  0x5e   :  { %1481 = vmatpush3.msra.mxu0 %v1981_v18  ;;  %1513 = vmatprep.subr.mxu1 %v1748_v1 }
  0x5f   :  { %1482 = vmatprep.subr.mxu0 %v1748_v1  ;;  %1514 = vmatpush3.msra.mxu1 %v744_v33  ;;  %v786_v33 = vand.u32 4294901760, %v785_v31  ;;  %v792_v34 = vsub.f32 %v2064_v25, %v2262_v32 }
  0x60   :  { %1483 = vmatpush3.msra.mxu0 %v1991_v24  ;;  %1515 = vmatprep.subr.mxu1 %v1748_v1 }
  0x61   :  { %1484 = vmatprep.subr.mxu0 %v1748_v1  ;;  %1516 = vmatpush3.msra.mxu1 %v751_v48  ;;  %v793_v47 = vand.u32 4294901760, %v792_v34 }
  0x62   :  { %1485 = vmatpush3.msra.mxu0 %v2006_v30  ;;  %1517 = vmatprep.subr.mxu1 %v1748_v1 }
  0x63   :  { %1486 = vmatprep.subr.mxu0 %v1748_v1  ;;  %1518 = vmatpush3.msra.mxu1 %v758_v60  ;;  %v1260_v60 = vld [vmem:[%s2256_s2] ss:$0 sm:$0xff] }
  0x64   :  { %1487 = vmatpush3.msra.mxu0 %v2019_v46  ;;  %1519 = vmatprep.subr.mxu1 %v1748_v1 }
  0x65   :  { %1488 = vmatprep.subr.mxu0 %v1748_v1  ;;  %1520 = vmatpush3.msra.mxu1 %v765_v9 }
  0x66   :  { %1489 = vmatpush3.msra.mxu0 %v2027_v51  ;;  %1521 = vmatprep.subr.mxu1 %v1748_v1 }
  0x67   :  { %1490 = vmatprep.subr.mxu0 %v1748_v1  ;;  %1522 = vmatpush3.msra.mxu1 %v772_v26 }
  0x68   :  { %1491 = vmatpush3.msra.mxu0 %v2041_v3  ;;  %1523 = vmatprep.subr.mxu1 %v1748_v1 }
  0x69   :  { %1492 = vmatprep.subr.mxu0 %v1748_v1  ;;  %1524 = vmatpush3.msra.mxu1 %v779_v27 }
  0x6a   :  { %1493 = vmatpush3.msra.mxu0 %v2051_v15  ;;  %1525 = vmatprep.subr.mxu1 %v1748_v1 }
  0x6b   :  { %1532 = vmatprep.subr.mxu0 %v1748_v1  ;;  %1526 = vmatpush3.msra.mxu1 %v786_v33 }
  0x6c   :  { %1527 = vmatprep.subr.mxu1 %v1748_v1 }
  0x6d   :  { %1528 = vmatpush3.msra.mxu1 %v793_v47 }
  0x6e   :  { %1567 = vmatprep.subr.mxu1 %v1748_v1 }
  0xf5   :  { %v158_v48 = vpop.f32.mrf.mxu0 }
  0xf6   :  { %v159_v9 = vadd.f32 %v1260_v60, %v158_v48 }
  0xf7   :  { %v1406_v49 = vpop.f32.mrf.mxu0 }
  0xf9   :  { %v249_v56 = vpop.f32.mrf.mxu1 }
  0xfa   :  { %v250_v20 = vadd.f32 %v249_v56, %v159_v9 }
  0xfb   :  { %v1417_v61 = vpop.f32.mrf.mxu1 }
  0xfe   :  { %v329_v8 = vpop.f32.mrf.mxu0 }
  0xff   :  { %v330_v31 = vadd.f32 %v329_v8, %v250_v20 }
 0x100   :  { %v1428_v16 = vpop.f32.mrf.mxu0 }
 0x104   :  { %v406_v26 = vpop.f32.mrf.mxu1 }
 0x105   :  { %v407_v34 = vadd.f32 %v406_v26, %v330_v31 }
 0x106   :  { %v1439_v27 = vpop.f32.mrf.mxu1 }
 0x107   :  { %v489_v33 = vpop.f32.mrf.mxu0 }
 0x108   :  { %v490_v32 = vadd.f32 %v489_v33, %v407_v34 }
 0x109   :  { %v1450_v47 = vpop.f32.mrf.mxu0 }
 0x10d   :  { %v564_v21 = vpop.f32.mrf.mxu1 }
 0x10e   :  { %v565_v10 = vadd.f32 %v564_v21, %v490_v32 }
 0x10f   :  { %v1461_v49 = vpop.f32.mrf.mxu1 }
 0x110   :  { %v568_v4 = vmax.f32 %v565_v10, 0.0 }
 0x112   :  { %v2084_v50 = vand.u32 4294901760, %v568_v4 }
 0x114   :  { %v2087_v36 = vsub.f32 %v568_v4, %v2084_v50  ;;  %1530 = vmatmul.mubr.f32.vlgmr.msra.gmra.mxu1 %v2084_v50 }
 0x115   :  { %1568 = vmatpush3.msra.mxu1 %v1852_v35  ;;  %1599 = vmatprep.mubr.msk.f32.mxu1 %vm1749_vm0, %v1748_v1 }
 0x116   :  { %v675_v48 = vand.u32 4294901760, %v2087_v36  ;;  %1569 = vmatprep.subr.mxu1 %v1748_v1 }
 0x117   :  { %1570 = vmatpush3.msra.mxu1 %v1859_v37 }
 0x118   :  { %v676_v10 = vsub.f32 %v2087_v36, %v675_v48  ;;  %1571 = vmatprep.subr.mxu1 %v1748_v1 }
 0x119   :  { %1572 = vmatpush3.msra.mxu1 %v1867_v39 }
 0x11a   :  { %1573 = vmatprep.subr.mxu1 %v1748_v1  ;;  %v677_v4 = vand.u32 4294901760, %v676_v10 }
 0x11b   :  { %1574 = vmatpush3.msra.mxu1 %v1925_v52 }
 0x11c   :  { %1575 = vmatprep.subr.mxu1 %v1748_v1  ;;  %1495 = vmatmul.mubr.f32.vlgmr.msra.gmra.mxu0 %v677_v4 }
 0x11d   :  { %1533 = vmatpush3.msra.mxu0 %v1865_v38  ;;  %1576 = vmatpush3.msra.mxu1 %v1930_v55  ;;  %v2270_v38 = vand.u32 4294901760, %v2031_v53 }
 0x11e   :  { %1534 = vmatprep.subr.mxu0 %v1748_v1  ;;  %1577 = vmatprep.subr.mxu1 %v1748_v1 }
 0x11f   :  { %1535 = vmatpush3.msra.mxu0 %v1873_v40  ;;  %1578 = vmatpush3.msra.mxu1 %v1938_v59  ;;  %v2272_v40 = vand.u32 4294901760, %v2049_v14 }
 0x120   :  { %1536 = vmatprep.subr.mxu0 %v1748_v1  ;;  %1579 = vmatprep.subr.mxu1 %v1748_v1 }
 0x121   :  { %1537 = vmatpush3.msra.mxu0 %v1882_v42  ;;  %1580 = vmatpush3.msra.mxu1 %v1949_v0 }
 0x122   :  { %1538 = vmatprep.subr.mxu0 %v1748_v1  ;;  %1581 = vmatprep.subr.mxu1 %v1748_v1 }
 0x123   :  { %1539 = vmatpush3.msra.mxu0 %v1928_v54  ;;  %1582 = vmatpush3.msra.mxu1 %v1961_v7 }
 0x124   :  { %1540 = vmatprep.subr.mxu0 %v1748_v1  ;;  %1583 = vmatprep.subr.mxu1 %v1748_v1 }
 0x125   :  { %1541 = vmatpush3.msra.mxu0 %v1936_v58  ;;  %1584 = vmatpush3.msra.mxu1 %v1968_v12 }
 0x126   :  { %1542 = vmatprep.subr.mxu0 %v1748_v1  ;;  %1585 = vmatprep.subr.mxu1 %v1748_v1 }
 0x127   :  { %1543 = vmatpush3.msra.mxu0 %v1947_v63  ;;  %1586 = vmatpush3.msra.mxu1 %v1981_v18 }
 0x128   :  { %1544 = vmatprep.subr.mxu0 %v1748_v1  ;;  %1587 = vmatprep.subr.mxu1 %v1748_v1 }
 0x129   :  { %1545 = vmatpush3.msra.mxu0 %v1958_v6  ;;  %1588 = vmatpush3.msra.mxu1 %v1991_v24 }
 0x12a   :  { %1546 = vmatprep.subr.mxu0 %v1748_v1  ;;  %1589 = vmatprep.subr.mxu1 %v1748_v1 }
 0x12b   :  { %1547 = vmatpush3.msra.mxu0 %v1972_v13  ;;  %1590 = vmatpush3.msra.mxu1 %v2006_v30 }
 0x12c   :  { %1548 = vmatprep.subr.mxu0 %v1748_v1  ;;  %1591 = vmatprep.subr.mxu1 %v1748_v1 }
 0x12d   :  { %1549 = vmatpush3.msra.mxu0 %v1979_v17  ;;  %1592 = vmatpush3.msra.mxu1 %v2019_v46  ;;  %v1262_v17 = vld [vmem:[%s2259_s5] ss:$0 sm:$0xff] }
 0x12e   :  { %1550 = vmatprep.subr.mxu0 %v1748_v1  ;;  %1593 = vmatprep.subr.mxu1 %v1748_v1 }
 0x12f   :  { %1551 = vmatpush3.msra.mxu0 %v1989_v23  ;;  %1594 = vmatpush3.msra.mxu1 %v2027_v51 }
 0x130   :  { %1552 = vmatprep.subr.mxu0 %v1748_v1  ;;  %1595 = vmatprep.subr.mxu1 %v1748_v1 }
 0x131   :  { %1553 = vmatpush3.msra.mxu0 %v2004_v29  ;;  %1596 = vmatpush3.msra.mxu1 %v2041_v3 }
 0x132   :  { %1554 = vmatprep.subr.mxu0 %v1748_v1  ;;  %1597 = vmatprep.subr.mxu1 %v1748_v1 }
 0x133   :  { %1555 = vmatpush3.msra.mxu0 %v2016_v44  ;;  %1598 = vmatpush3.msra.mxu1 %v2051_v15 }
 0x134   :  { %1556 = vmatprep.subr.mxu0 %v1748_v1  ;;  %1600 = vmatmul.mubr.f32.vlgmr.msra.gmra.mxu1 %v675_v48 }
 0x135   :  { %1637 = vmatprep.subr.mxu1 %v1748_v1  ;;  %1557 = vmatpush3.msra.mxu0 %v2031_v53 }
 0x136   :  { %1638 = vmatpush3.msra.mxu1 %v1852_v35  ;;  %1558 = vmatprep.subr.mxu0 %v1748_v1  ;;  %v2268_v35 = vand.u32 4294901760, %v2004_v29 }
 0x137   :  { %1639 = vmatprep.subr.mxu1 %v1748_v1  ;;  %1559 = vmatpush3.msra.mxu0 %v2039_v2 }
 0x138   :  { %1640 = vmatpush3.msra.mxu1 %v1859_v37  ;;  %1560 = vmatprep.subr.mxu0 %v1748_v1  ;;  %v2269_v37 = vand.u32 4294901760, %v2016_v44 }
 0x139   :  { %1641 = vmatprep.subr.mxu1 %v1748_v1  ;;  %1561 = vmatpush3.msra.mxu0 %v2049_v14 }
 0x13a   :  { %1642 = vmatpush3.msra.mxu1 %v1867_v39  ;;  %1562 = vmatprep.subr.mxu0 %v1748_v1  ;;  %v2271_v39 = vand.u32 4294901760, %v2039_v2 }
 0x13b   :  { %1643 = vmatprep.subr.mxu1 %v1748_v1  ;;  %1563 = vmatpush3.msra.mxu0 %v2064_v25 }
 0x13c   :  { %1564 = vmatprep.mubr.msk.f32.mxu0 %vm1749_vm0, %v1748_v1  ;;  %1644 = vmatpush3.msra.mxu1 %v1925_v52 }
 0x13d   :  { %1565 = vmatmul.mubr.f32.vlgmr.msra.gmra.mxu0 %v2087_v36  ;;  %1602 = vmatprep.subr.mxu0 %v1748_v1 }
 0x13e   :  { %1645 = vmatprep.subr.mxu1 %v1748_v1  ;;  %1603 = vmatpush3.msra.mxu0 %v686_v41  ;;  %v2273_v41 = vand.u32 4294901760, %v2064_v25 }
 0x13f   :  { %1646 = vmatpush3.msra.mxu1 %v1930_v55  ;;  %1604 = vmatprep.subr.mxu0 %v1748_v1 }
 0x140   :  { %1647 = vmatprep.subr.mxu1 %v1748_v1  ;;  %1605 = vmatpush3.msra.mxu0 %v693_v43 }
 0x141   :  { %1648 = vmatpush3.msra.mxu1 %v1938_v59  ;;  %1606 = vmatprep.subr.mxu0 %v1748_v1  ;;  %v1261_v59 = vld [vmem:[%s2258_s4] ss:$0 sm:$0xff] }
 0x142   :  { %1649 = vmatprep.subr.mxu1 %v1748_v1  ;;  %1607 = vmatpush3.msra.mxu0 %v700_v45 }
 0x143   :  { %1650 = vmatpush3.msra.mxu1 %v1949_v0  ;;  %1608 = vmatprep.subr.mxu0 %v1748_v1 }
 0x144   :  { %1651 = vmatprep.subr.mxu1 %v1748_v1  ;;  %1609 = vmatpush3.msra.mxu0 %v707_v57 }
 0x145   :  { %1652 = vmatpush3.msra.mxu1 %v1961_v7  ;;  %1610 = vmatprep.subr.mxu0 %v1748_v1 }
 0x146   :  { %1653 = vmatprep.subr.mxu1 %v1748_v1  ;;  %1611 = vmatpush3.msra.mxu0 %v714_v62 }
 0x147   :  { %1654 = vmatpush3.msra.mxu1 %v1968_v12  ;;  %1612 = vmatprep.subr.mxu0 %v1748_v1 }
 0x148   :  { %1655 = vmatprep.subr.mxu1 %v1748_v1  ;;  %1613 = vmatpush3.msra.mxu0 %v721_v5 }
 0x149   :  { %1656 = vmatpush3.msra.mxu1 %v1981_v18  ;;  %1614 = vmatprep.subr.mxu0 %v1748_v1 }
 0x14a   :  { %1657 = vmatprep.subr.mxu1 %v1748_v1  ;;  %1615 = vmatpush3.msra.mxu0 %v728_v11 }
 0x14b   :  { %1658 = vmatpush3.msra.mxu1 %v1991_v24  ;;  %1616 = vmatprep.subr.mxu0 %v1748_v1 }
 0x14c   :  { %1659 = vmatprep.subr.mxu1 %v1748_v1  ;;  %1617 = vmatpush3.msra.mxu0 %v735_v19 }
 0x14d   :  { %1660 = vmatpush3.msra.mxu1 %v2006_v30  ;;  %1618 = vmatprep.subr.mxu0 %v1748_v1 }
 0x14e   :  { %1661 = vmatprep.subr.mxu1 %v1748_v1  ;;  %1619 = vmatpush3.msra.mxu0 %v742_v22  ;;  %v1263_v22 = vld [vmem:[#allocation2] ss:$0 sm:$0xff] }
 0x14f   :  { %1662 = vmatpush3.msra.mxu1 %v2019_v46  ;;  %1620 = vmatprep.subr.mxu0 %v1748_v1 }
 0x150   :  { %1663 = vmatprep.subr.mxu1 %v1748_v1  ;;  %1621 = vmatpush3.msra.mxu0 %v749_v28 }
 0x151   :  { %1664 = vmatpush3.msra.mxu1 %v2027_v51  ;;  %1622 = vmatprep.subr.mxu0 %v1748_v1 }
 0x152   :  { %1665 = vmatprep.subr.mxu1 %v1748_v1  ;;  %1623 = vmatpush3.msra.mxu0 %v2268_v35 }
 0x153   :  { %1666 = vmatpush3.msra.mxu1 %v2041_v3  ;;  %1624 = vmatprep.subr.mxu0 %v1748_v1 }
 0x154   :  { %1667 = vmatprep.subr.mxu1 %v1748_v1  ;;  %1625 = vmatpush3.msra.mxu0 %v2269_v37 }
 0x155   :  { %1668 = vmatpush3.msra.mxu1 %v2051_v15  ;;  %1669 = vmatprep.mubr.msk.f32.mxu1 %vm1749_vm0, %v1748_v1 }
 0x156   :  { %1626 = vmatprep.subr.mxu0 %v1748_v1  ;;  %1670 = vmatmul.mubr.f32.vlgmr.msra.gmra.mxu1 %v2084_v50 }
 0x157   :  { %1627 = vmatpush3.msra.mxu0 %v2270_v38  ;;  %1634 = vmatprep.mubr.msk.f32.mxu0 %vm1749_vm0, %v1748_v1 }
 0x158   :  { %1628 = vmatprep.subr.mxu0 %v1748_v1 }
 0x159   :  { %1629 = vmatpush3.msra.mxu0 %v2271_v39 }
 0x15a   :  { %1630 = vmatprep.subr.mxu0 %v1748_v1 }
 0x15b   :  { %1631 = vmatpush3.msra.mxu0 %v2272_v40 }
 0x15c   :  { %1632 = vmatprep.subr.mxu0 %v1748_v1 }
 0x15d   :  { %1633 = vmatpush3.msra.mxu0 %v2273_v41 }
 0x15e   :  { %1635 = vmatmul.mubr.f32.vlgmr.msra.gmra.mxu0 %v2084_v50 }
 0x1d4   :  { %v830_v42 = vpop.f32.mrf.mxu1 }
 0x1d6   :  { %v1531_v43 = vpop.f32.mrf.mxu1 }
 0x1dc   :  { %v679_v45 = vpop.f32.mrf.mxu0 }
 0x1dd   :  { %v680_v62 = vadd.f32 %v1261_v59, %v679_v45 }
 0x1de   :  { %v1496_v52 = vpop.f32.mrf.mxu0 }
 0x1df   :  { %v831_v1 = vadd.f32 %v830_v42, %v680_v62 }
 0x1f4   :  { %v1023_v54 = vpop.f32.mrf.mxu1 }
 0x1f6   :  { %v1601_v55 = vpop.f32.mrf.mxu1 }
 0x1fd   :  { %v934_v57 = vpop.f32.mrf.mxu0 }
 0x1fe   :  { %v935_v5 = vadd.f32 %v934_v57, %v831_v1 }
 0x1ff   :  { %v1566_v58 = vpop.f32.mrf.mxu0 }
 0x200   :  { %v1024_v6 = vadd.f32 %v1023_v54, %v935_v5 }
 0x216   :  { %v1229_v63 = vpop.f32.mrf.mxu1 }
 0x218   :  { %v1671_v0 = vpop.f32.mrf.mxu1 }
 0x21e   :  { %v1142_v7 = vpop.f32.mrf.mxu0 }
 0x21f   :  { %v1143_v11 = vadd.f32 %v1142_v7, %v1024_v6 }
 0x220   :  { %v1636_v12 = vpop.f32.mrf.mxu0 }
 0x221   :  { %v1230_v13 = vadd.f32 %v1229_v63, %v1143_v11 }
 0x223   :  { %v1233_v18 = vmax.f32 %v1230_v13, 0.0 }
 0x225   :  { %v1241_v19 = vmul.f32 %v1262_v17, %v1233_v18 }
 0x227   :  { %1242 = vadd.xlane.f32.xlu0 %v1241_v19 }
 0x2b0   :  { %v1243_v23 = vpop.xlane.xlu0 %1242 }
 0x2b1   :  { %v1251_v24 = vadd.f32 %v1263_v22, %v1243_v23 }
 0x2b3   :  { %1253 = vst.msk [vmem:[%s2261_s7] sm:$0xff] %vm1252_vm2, %v1251_v24 }
 0x2b4   :  { %1258 = vsyncpa [#allocation4], 1 }
 0x2b5   :  { %1259 = vsyncpa [#allocation6], 1 }

</bundles_post_ra>
